<compile_context>
chip_gen: v5e
topology: v5e:2x2
jax: 0.10.0
libtpu: 0.0.40
codegen_flags: <defaults>
</compile_context>

<pallas_src>
import functools

import jax
import jax.numpy as jnp
from jax.experimental import pallas as pl
from jax.experimental.pallas import tpu as pltpu


_LANES = 128
# ~4 MiB of input per grid step: large enough that per-step pipeline overhead
# (~0.35 us) is negligible on every generation, small enough that the
# double-buffered input stays far inside the scoped VMEM limit.
_MAX_BLOCK_BYTES = 4 * 1024 * 1024
# Budget for the single-invocation fused fast path (all inputs resident in
# VMEM at once; no pipelining).
_FAST_PATH_PER_TENSOR_BYTES = 2 * 1024 * 1024
_FAST_PATH_TOTAL_BYTES = 6 * 1024 * 1024


def _round_up(x: int, m: int) -> int:
    return ((x + m - 1) // m) * m


def _cdiv(a: int, b: int) -> int:
    return (a + b - 1) // b


def _sublane_align(dtype) -> int:
    # f32 -> 8, bf16/f16 -> 16, int8/fp8 -> 32 (sub-32-bit packs along sublanes).
    return max(8, 32 // max(1, jnp.dtype(dtype).itemsize))


# ---------------------------------------------------------------------------
# Fast path: all small tensors fused into one grid-less pallas_call.
# ---------------------------------------------------------------------------
def _fused_small_kernel(*refs):
    """refs = (*input_refs, out_ref).  out_ref is SMEM (1, num_inputs) f32.

    Writes sum((x - 1)^2) per input tensor; the 1/n weighting and the outer
    sum over tensors happen in the (tiny) JAX epilogue.
    """
    o_ref = refs[-1]
    for idx, ref in enumerate(refs[:-1]):
        d = ref[...].astype(jnp.float32) - 1.0
        o_ref[0, idx] = jnp.sum(d * d)


def _small_path_loss(tensors, sizes):
    sums = pl.pallas_call(
        _fused_small_kernel,
        out_shape=jax.ShapeDtypeStruct((1, len(tensors)), jnp.float32),
        in_specs=[pl.BlockSpec(memory_space=pltpu.MemorySpace.VMEM)] * len(tensors),
        out_specs=pl.BlockSpec(memory_space=pltpu.MemorySpace.SMEM),
    )(*tensors)
    inv_n = jnp.asarray([1.0 / n for n in sizes], dtype=jnp.float32)
    return jnp.dot(sums[0, :], inv_n)


# ---------------------------------------------------------------------------
# Large-tensor path: tiled per-lane partial sums of (x - 1)^2.
# ---------------------------------------------------------------------------
def _lane_sums_kernel(x_ref, o_ref):
    """x_ref: (block_rows, 128) tile; o_ref: (1, 128) per-block lane sums."""
    d = x_ref[...].astype(jnp.float32) - 1.0
    o_ref[...] = jnp.sum(d * d, axis=0, keepdims=True)


def _large_tensor_sq_sum(x_flat, n):
    """sum((x - 1)^2) over a flat tensor of n (>0) elements, via a tiled kernel."""
    dtype = x_flat.dtype
    itemsize = jnp.dtype(dtype).itemsize
    row_align = _sublane_align(dtype)
    max_block_rows = max(
        row_align, (_MAX_BLOCK_BYTES // (_LANES * itemsize)) // row_align * row_align)

    rows = _cdiv(n, _LANES)
    if rows <= max_block_rows:
        num_blocks = 1
    else:
        # Balanced split; even block count keeps both v7x TensorCores busy on
        # the "parallel" grid axis (harmless on single-TC v5e/v6e).
        num_blocks = _round_up(_cdiv(rows, max_block_rows), 2)
    block_rows = _round_up(_cdiv(rows, num_blocks), row_align)
    total_rows = num_blocks * block_rows

    # Pad with 1.0 (zero contribution to (x-1)^2).  Waste is < num_blocks
    # aligned row-groups, i.e. negligible versus the tensor itself.
    # TODO(synk): the pad still materializes one extra HBM copy of this tensor;
    # allow_input_fusion could let XLA fuse it into the pallas input.
    pad = total_rows * _LANES - n
    x_flat = jnp.pad(x_flat, (0, pad), constant_values=jnp.asarray(1, dtype))
    x2d = x_flat.reshape(total_rows, _LANES)

    lane_sums = pl.pallas_call(
        _lane_sums_kernel,
        out_shape=jax.ShapeDtypeStruct((1, num_blocks * _LANES), jnp.float32),
        grid_spec=pltpu.PrefetchScalarGridSpec(
            num_scalar_prefetch=0,
            grid=(num_blocks,),
            in_specs=[pl.BlockSpec((block_rows, _LANES), lambda i: (i, 0))],
            out_specs=pl.BlockSpec((1, _LANES), lambda i: (0, i)),
        ),
        compiler_params=pltpu.CompilerParams(
            dimension_semantics=("parallel",),
            vmem_limit_bytes=32 * 1024 * 1024,
        ),
        cost_estimate=pl.CostEstimate(
            flops=3 * total_rows * _LANES,
            transcendentals=0,
            bytes_accessed=total_rows * _LANES * itemsize + num_blocks * _LANES * 4,
        ),
    )(x2d)
    return jnp.sum(lane_sums)


# ---------------------------------------------------------------------------
# Public entry point (AdvGLoss.forward equivalent).
# ---------------------------------------------------------------------------
def adv_g_loss(msd_out_fake, mpd_out_fake):
    """Returns scalar f32:  sum_i mean((out_i - 1)^2)  over all MSD + MPD outputs."""
    outs = [o for group in (msd_out_fake, mpd_out_fake) for o in group]
    outs = [o for o in outs if int(o.size) > 0]   # guard: mean of empty tensor
    if not outs:
        return jnp.float32(0.0)

    small, small_sizes, large = [], [], []
    budget = 0
    for o in outs:
        n = int(o.size)
        if o.ndim == 0:
            o2 = o.reshape(1, 1)
        elif o.ndim == 1:
            o2 = o.reshape(1, -1)
        else:
            o2 = o.reshape(-1, o.shape[-1])       # free collapse of leading dims
        r, c = o2.shape
        est = (_round_up(r, _sublane_align(o2.dtype))
               * _round_up(c, _LANES)
               * jnp.dtype(o2.dtype).itemsize)
        if est <= _FAST_PATH_PER_TENSOR_BYTES and budget + est <= _FAST_PATH_TOTAL_BYTES:
            small.append(o2)
            small_sizes.append(n)
            budget += est
        else:
            large.append((o.reshape(-1), n))

    loss = jnp.float32(0.0)
    if small:
        loss = loss + _small_path_loss(small, small_sizes)
    for flat, n in large:
        loss = loss + _large_tensor_sq_sum(flat, n) * jnp.float32(1.0 / n)
    return loss


def _reference_loss(msd_out_fake, mpd_out_fake):
    loss = jnp.float32(0.0)
    for out_fake in [msd_out_fake, mpd_out_fake]:
        for out in out_fake:
            loss = loss + jnp.mean((out.astype(jnp.float32) - 1.0) ** 2)
    return loss


if __name__ == "__main__":
    key = jax.random.PRNGKey(0)
    k = jax.random.split(key, 12)

    # Small shapes mimicking HiFi-GAN-style discriminator outputs:
    # MSD: (batch, 1, time) at a few scales; MPD: (batch, 1, time//p, p).
    msd_out_fake = [
        jax.random.normal(k[0], (2, 1, 64), dtype=jnp.float32),
        jax.random.normal(k[1], (2, 1, 32), dtype=jnp.float32),
        jax.random.normal(k[2], (2, 1, 16), dtype=jnp.float32),
    ]
    mpd_out_fake = [
        jax.random.normal(k[3], (2, 1, 16, 2), dtype=jnp.float32),
        jax.random.normal(k[4], (2, 1, 11, 3), dtype=jnp.float32),
        jax.random.normal(k[5], (2, 1, 7, 5), dtype=jnp.float32),
        jax.random.normal(k[6], (2, 1, 5, 7), dtype=jnp.float32),
        jax.random.normal(k[7], (2, 1, 3, 11), dtype=jnp.float32),
    ]

    # 1) Typical case: all tiny outputs -> single fused fast-path kernel.
    loss = jax.block_until_ready(adv_g_loss(msd_out_fake, mpd_out_fake))
    ref = _reference_loss(msd_out_fake, mpd_out_fake)
    assert jnp.allclose(loss, ref, rtol=1e-5, atol=1e-5), (loss, ref)

    # 2) Mid-size output mixed with tiny ones (still one fused fast-path call).
    msd_mid = msd_out_fake + [
        jax.random.normal(k[8], (2, 1, 40000), dtype=jnp.float32)]
    loss2 = jax.block_until_ready(adv_g_loss(msd_mid, mpd_out_fake))
    ref2 = _reference_loss(msd_mid, mpd_out_fake)
    assert jnp.allclose(loss2, ref2, rtol=1e-5, atol=1e-5), (loss2, ref2)

    # 3) Large f32 output with an odd element count -> tiled multi-block path
    #    (balanced blocks, even block count for the 2-TC v7x split).
    msd_big = msd_out_fake + [
        jax.random.normal(k[9], (1, 1, 2_500_037), dtype=jnp.float32)]
    loss3 = jax.block_until_ready(adv_g_loss(msd_big, mpd_out_fake))
    ref3 = _reference_loss(msd_big, mpd_out_fake)
    assert jnp.allclose(loss3, ref3, rtol=1e-4, atol=1e-5), (loss3, ref3)

    # 4) bf16 everywhere + one large bf16 tensor (16-row alignment, single
    #    ~3 MiB block); kernels keep bf16 in HBM and accumulate in f32.
    msd_bf16 = [o.astype(jnp.bfloat16) for o in msd_out_fake]
    mpd_bf16 = [o.astype(jnp.bfloat16) for o in mpd_out_fake]
    big_bf16 = [jax.random.normal(k[10], (1, 1, 1_500_003)).astype(jnp.bfloat16)]
    loss4 = jax.block_until_ready(adv_g_loss(msd_bf16 + big_bf16, mpd_bf16))
    ref4 = _reference_loss(msd_bf16 + big_bf16, mpd_bf16)
    assert jnp.allclose(loss4, ref4, rtol=2e-3, atol=2e-3), (loss4, ref4)

    print("KERNEL_OK")
</pallas_src>

<mosaic_0001>
module attributes {stable_mosaic.version = 11 : i64} {
  func.func @_fused_small_kernel(%arg0: memref<2x64xf32, #tpu.memory_space<vmem>>, %arg1: memref<2x32xf32, #tpu.memory_space<vmem>>, %arg2: memref<2x16xf32, #tpu.memory_space<vmem>>, %arg3: memref<32x2xf32, #tpu.memory_space<vmem>>, %arg4: memref<22x3xf32, #tpu.memory_space<vmem>>, %arg5: memref<14x5xf32, #tpu.memory_space<vmem>>, %arg6: memref<10x7xf32, #tpu.memory_space<vmem>>, %arg7: memref<6x11xf32, #tpu.memory_space<vmem>>, %arg8: memref<1x8xf32, #tpu.memory_space<smem>>) attributes {dimension_semantics = [], scalar_prefetch = 0 : i64, scratch_operands = 0 : i64, tpu.core_type = #tpu.core_type<tc>} {
    %c0 = arith.constant 0 : index
    %c0_0 = arith.constant 0 : index
    %0 = vector.load %arg0[%c0, %c0_0] : memref<2x64xf32, #tpu.memory_space<vmem>>, vector<2x64xf32>
    %cst = arith.constant 1.000000e+00 : f32
    %1 = vector.broadcast %cst : f32 to vector<2x64xf32>
    %2 = arith.subf %0, %1 : vector<2x64xf32>
    %3 = arith.mulf %2, %2 : vector<2x64xf32>
    %4 = vector.shape_cast %3 : vector<2x64xf32> to vector<1x2x64xf32>
    %cst_1 = arith.constant dense<0.000000e+00> : vector<1xf32>
    %5 = vector.multi_reduction <add>, %4, %cst_1 [1, 2] : vector<1x2x64xf32> to vector<1xf32>
    %6 = vector.shape_cast %5 : vector<1xf32> to vector<1x1x1xf32>
    %7 = vector.extract %6[0, 0, 0] : f32 from vector<1x1x1xf32>
    %c0_2 = arith.constant 0 : index
    %c0_3 = arith.constant 0 : index
    %8 = memref.load %arg8[%c0_2, %c0_3] : memref<1x8xf32, #tpu.memory_space<smem>>
    memref.store %7, %arg8[%c0_2, %c0_3] : memref<1x8xf32, #tpu.memory_space<smem>>
    %c0_4 = arith.constant 0 : index
    %c0_5 = arith.constant 0 : index
    %9 = vector.load %arg1[%c0_4, %c0_5] : memref<2x32xf32, #tpu.memory_space<vmem>>, vector<2x32xf32>
    %cst_6 = arith.constant 1.000000e+00 : f32
    %10 = vector.broadcast %cst_6 : f32 to vector<2x32xf32>
    %11 = arith.subf %9, %10 : vector<2x32xf32>
    %12 = arith.mulf %11, %11 : vector<2x32xf32>
    %13 = vector.shape_cast %12 : vector<2x32xf32> to vector<1x2x32xf32>
    %cst_7 = arith.constant dense<0.000000e+00> : vector<1xf32>
    %14 = vector.multi_reduction <add>, %13, %cst_7 [1, 2] : vector<1x2x32xf32> to vector<1xf32>
    %15 = vector.shape_cast %14 : vector<1xf32> to vector<1x1x1xf32>
    %16 = vector.extract %15[0, 0, 0] : f32 from vector<1x1x1xf32>
    %c0_8 = arith.constant 0 : index
    %c1 = arith.constant 1 : index
    %17 = memref.load %arg8[%c0_8, %c1] : memref<1x8xf32, #tpu.memory_space<smem>>
    memref.store %16, %arg8[%c0_8, %c1] : memref<1x8xf32, #tpu.memory_space<smem>>
    %c0_9 = arith.constant 0 : index
    %c0_10 = arith.constant 0 : index
    %18 = vector.load %arg2[%c0_9, %c0_10] : memref<2x16xf32, #tpu.memory_space<vmem>>, vector<2x16xf32>
    %cst_11 = arith.constant 1.000000e+00 : f32
    %19 = vector.broadcast %cst_11 : f32 to vector<2x16xf32>
    %20 = arith.subf %18, %19 : vector<2x16xf32>
    %21 = arith.mulf %20, %20 : vector<2x16xf32>
    %22 = vector.shape_cast %21 : vector<2x16xf32> to vector<1x2x16xf32>
    %cst_12 = arith.constant dense<0.000000e+00> : vector<1xf32>
    %23 = vector.multi_reduction <add>, %22, %cst_12 [1, 2] : vector<1x2x16xf32> to vector<1xf32>
    %24 = vector.shape_cast %23 : vector<1xf32> to vector<1x1x1xf32>
    %25 = vector.extract %24[0, 0, 0] : f32 from vector<1x1x1xf32>
    %c0_13 = arith.constant 0 : index
    %c2 = arith.constant 2 : index
    %26 = memref.load %arg8[%c0_13, %c2] : memref<1x8xf32, #tpu.memory_space<smem>>
    memref.store %25, %arg8[%c0_13, %c2] : memref<1x8xf32, #tpu.memory_space<smem>>
    %c0_14 = arith.constant 0 : index
    %c0_15 = arith.constant 0 : index
    %27 = vector.load %arg3[%c0_14, %c0_15] : memref<32x2xf32, #tpu.memory_space<vmem>>, vector<32x2xf32>
    %cst_16 = arith.constant 1.000000e+00 : f32
    %28 = vector.broadcast %cst_16 : f32 to vector<32x2xf32>
    %29 = arith.subf %27, %28 : vector<32x2xf32>
    %30 = arith.mulf %29, %29 : vector<32x2xf32>
    %31 = vector.shape_cast %30 : vector<32x2xf32> to vector<1x32x2xf32>
    %cst_17 = arith.constant dense<0.000000e+00> : vector<1xf32>
    %32 = vector.multi_reduction <add>, %31, %cst_17 [1, 2] : vector<1x32x2xf32> to vector<1xf32>
    %33 = vector.shape_cast %32 : vector<1xf32> to vector<1x1x1xf32>
    %34 = vector.extract %33[0, 0, 0] : f32 from vector<1x1x1xf32>
    %c0_18 = arith.constant 0 : index
    %c3 = arith.constant 3 : index
    %35 = memref.load %arg8[%c0_18, %c3] : memref<1x8xf32, #tpu.memory_space<smem>>
    memref.store %34, %arg8[%c0_18, %c3] : memref<1x8xf32, #tpu.memory_space<smem>>
    %c0_19 = arith.constant 0 : index
    %c0_20 = arith.constant 0 : index
    %36 = vector.load %arg4[%c0_19, %c0_20] : memref<22x3xf32, #tpu.memory_space<vmem>>, vector<22x3xf32>
    %cst_21 = arith.constant 1.000000e+00 : f32
    %37 = vector.broadcast %cst_21 : f32 to vector<22x3xf32>
    %38 = arith.subf %36, %37 : vector<22x3xf32>
    %39 = arith.mulf %38, %38 : vector<22x3xf32>
    %40 = vector.shape_cast %39 : vector<22x3xf32> to vector<1x22x3xf32>
    %cst_22 = arith.constant dense<0.000000e+00> : vector<1xf32>
    %41 = vector.multi_reduction <add>, %40, %cst_22 [1, 2] : vector<1x22x3xf32> to vector<1xf32>
    %42 = vector.shape_cast %41 : vector<1xf32> to vector<1x1x1xf32>
    %43 = vector.extract %42[0, 0, 0] : f32 from vector<1x1x1xf32>
    %c0_23 = arith.constant 0 : index
    %c4 = arith.constant 4 : index
    %44 = memref.load %arg8[%c0_23, %c4] : memref<1x8xf32, #tpu.memory_space<smem>>
    memref.store %43, %arg8[%c0_23, %c4] : memref<1x8xf32, #tpu.memory_space<smem>>
    %c0_24 = arith.constant 0 : index
    %c0_25 = arith.constant 0 : index
    %45 = vector.load %arg5[%c0_24, %c0_25] : memref<14x5xf32, #tpu.memory_space<vmem>>, vector<14x5xf32>
    %cst_26 = arith.constant 1.000000e+00 : f32
    %46 = vector.broadcast %cst_26 : f32 to vector<14x5xf32>
    %47 = arith.subf %45, %46 : vector<14x5xf32>
    %48 = arith.mulf %47, %47 : vector<14x5xf32>
    %49 = vector.shape_cast %48 : vector<14x5xf32> to vector<1x14x5xf32>
    %cst_27 = arith.constant dense<0.000000e+00> : vector<1xf32>
    %50 = vector.multi_reduction <add>, %49, %cst_27 [1, 2] : vector<1x14x5xf32> to vector<1xf32>
    %51 = vector.shape_cast %50 : vector<1xf32> to vector<1x1x1xf32>
    %52 = vector.extract %51[0, 0, 0] : f32 from vector<1x1x1xf32>
    %c0_28 = arith.constant 0 : index
    %c5 = arith.constant 5 : index
    %53 = memref.load %arg8[%c0_28, %c5] : memref<1x8xf32, #tpu.memory_space<smem>>
    memref.store %52, %arg8[%c0_28, %c5] : memref<1x8xf32, #tpu.memory_space<smem>>
    %c0_29 = arith.constant 0 : index
    %c0_30 = arith.constant 0 : index
    %54 = vector.load %arg6[%c0_29, %c0_30] : memref<10x7xf32, #tpu.memory_space<vmem>>, vector<10x7xf32>
    %cst_31 = arith.constant 1.000000e+00 : f32
    %55 = vector.broadcast %cst_31 : f32 to vector<10x7xf32>
    %56 = arith.subf %54, %55 : vector<10x7xf32>
    %57 = arith.mulf %56, %56 : vector<10x7xf32>
    %58 = vector.shape_cast %57 : vector<10x7xf32> to vector<1x10x7xf32>
    %cst_32 = arith.constant dense<0.000000e+00> : vector<1xf32>
    %59 = vector.multi_reduction <add>, %58, %cst_32 [1, 2] : vector<1x10x7xf32> to vector<1xf32>
    %60 = vector.shape_cast %59 : vector<1xf32> to vector<1x1x1xf32>
    %61 = vector.extract %60[0, 0, 0] : f32 from vector<1x1x1xf32>
    %c0_33 = arith.constant 0 : index
    %c6 = arith.constant 6 : index
    %62 = memref.load %arg8[%c0_33, %c6] : memref<1x8xf32, #tpu.memory_space<smem>>
    memref.store %61, %arg8[%c0_33, %c6] : memref<1x8xf32, #tpu.memory_space<smem>>
    %c0_34 = arith.constant 0 : index
    %c0_35 = arith.constant 0 : index
    %63 = vector.load %arg7[%c0_34, %c0_35] : memref<6x11xf32, #tpu.memory_space<vmem>>, vector<6x11xf32>
    %cst_36 = arith.constant 1.000000e+00 : f32
    %64 = vector.broadcast %cst_36 : f32 to vector<6x11xf32>
    %65 = arith.subf %63, %64 : vector<6x11xf32>
    %66 = arith.mulf %65, %65 : vector<6x11xf32>
    %67 = vector.shape_cast %66 : vector<6x11xf32> to vector<1x6x11xf32>
    %cst_37 = arith.constant dense<0.000000e+00> : vector<1xf32>
    %68 = vector.multi_reduction <add>, %67, %cst_37 [1, 2] : vector<1x6x11xf32> to vector<1xf32>
    %69 = vector.shape_cast %68 : vector<1xf32> to vector<1x1x1xf32>
    %70 = vector.extract %69[0, 0, 0] : f32 from vector<1x1x1xf32>
    %c0_38 = arith.constant 0 : index
    %c7 = arith.constant 7 : index
    %71 = memref.load %arg8[%c0_38, %c7] : memref<1x8xf32, #tpu.memory_space<smem>>
    memref.store %70, %arg8[%c0_38, %c7] : memref<1x8xf32, #tpu.memory_space<smem>>
    return
  }
}

</mosaic_0001>

<bundles_post_ra>
// kernel: tpu_custom_call.1
= control target key start
LH: loop header
LB: loop body
LE: loop exit
PB: predicated region body
PF: predicated region fallthrough
CT: control target
= control target key end

     0   :  { %vm65_vm0 = vcmask 123904   ;;  %vm33_vm1 = vcmask 517120   ;;  %vm118_vm2 = vcmask 23552   ;;  %vm122_vm3 = vcmask 21504   ;;  %s357_s0 = inlined_call_operand.vmem [shape: f32[2,64], index: 0, kind: input, shape index: {}]   ;;  %s358_s1 = inlined_call_operand.vmem [shape: f32[2,32], index: 1, kind: input, shape index: {}]   ;;  %s359_s2 = inlined_call_operand.vmem [shape: f32[2,16], index: 2, kind: input, shape index: {}]   ;;  %s360_s3 = inlined_call_operand.vmem [shape: f32[32,2], index: 3, kind: input, shape index: {}]   ;;  %s361_s4 = inlined_call_operand.vmem [shape: f32[22,3], index: 4, kind: input, shape index: {}]   ;;  %s362_s5 = inlined_call_operand.vmem [shape: f32[14,5], index: 5, kind: input, shape index: {}]   ;;  %s363_s6 = inlined_call_operand.vmem [shape: f32[10,7], index: 6, kind: input, shape index: {}]   ;;  %s364_s7 = inlined_call_operand.vmem [shape: f32[6,11], index: 7, kind: input, shape index: {}]   ;;  %s365_s8 = inlined_call_operand.hbm [shape: f32[1,8], index: 8, kind: output, shape index: {}]  }
   0x1   :  { %v62_v0 = vld [vmem:[%s359_s2] sm:$0x3]  ;;  %v110_v5 = vld [vmem:[%s361_s4 + $0x8] sm:$0xff]  ;;  %v111_v6 = vld [vmem:[%s361_s4 + $0x10] sm:$0x3f] }
   0x2   :  { %v30_v1 = vld [vmem:[%s357_s0] sm:$0x3]  ;;  %v213_v2 = vadd.f32 -1.0, %v62_v0  ;;  %v219_v8 = vadd.f32 -1.0, %v110_v5  ;;  %v220_v9 = vadd.f32 -1.0, %v111_v6  ;;  %v79_v11 = vld [vmem:[%s360_s3 + $0x8] sm:$0xff] }
   0x3   :  { %v211_v3 = vadd.f32 -1.0, %v30_v1  ;;  %v109_v4 = vld [vmem:[%s361_s4] sm:$0xff]  ;;  %v80_v14 = vld [vmem:[%s360_s3 + $0x10] sm:$0xff]  ;;  %v81_v15 = vld [vmem:[%s360_s3 + $0x18] sm:$0xff]  ;;  %v215_v20 = vadd.f32 -1.0, %v79_v11 }
   0x4   :  { %v218_v7 = vadd.f32 -1.0, %v109_v4  ;;  %v78_v10 = vld [vmem:[%s360_s3] sm:$0xff]  ;;  %v64_v12 = vmul.f32 %v213_v2, %v213_v2  ;;  %v116_v18 = vmul.f32 %v219_v8, %v219_v8  ;;  %v117_v19 = vmul.f32 %v220_v9, %v220_v9  ;;  %v137_v35 = vld [vmem:[%s362_s5 + $0x8] sm:$0x3f] }
   0x5   :  { %v32_v13 = vmul.f32 %v211_v3, %v211_v3  ;;  %v214_v16 = vadd.f32 -1.0, %v78_v10  ;;  %v46_v21 = vld [vmem:[%s358_s1] sm:$0x3]  ;;  %v216_v24 = vadd.f32 -1.0, %v80_v14  ;;  %v217_v25 = vadd.f32 -1.0, %v81_v15 }
   0x6   :  { %v115_v17 = vmul.f32 %v218_v7, %v218_v7  ;;  %v66_v22 = vsel %vm65_vm0, %v64_v12, 0.0  ;;  %v136_v26 = vld [vmem:[%s362_s5] sm:$0xff]  ;;  %v120_v28 = vsel %vm118_vm2, %v116_v18, 0.0  ;;  %v123_v29 = vsel %vm122_vm3, %v117_v19, 0.0 }
   0x7   :  { %v34_v23 = vsel %vm33_vm1, %v32_v13, 0.0  ;;  %67 = vadd.xlane.f32.xlu1 %v66_v22  ;;  %v86_v30 = vmul.f32 %v214_v16, %v214_v16  ;;  %v87_v32 = vmul.f32 %v215_v20, %v215_v20  ;;  %v88_v33 = vmul.f32 %v216_v24, %v216_v24 }
   0x8   :  { %35 = vadd.xlane.f32.xlu0 %v34_v23  ;;  %v119_v27 = vsel %vm118_vm2, %v115_v17, 0.0  ;;  %v89_v34 = vmul.f32 %v217_v25, %v217_v25 }
   0x9   :  { %v121_v31 = vadd.f32 %v120_v28, %v119_v27 }
   0xa   :  { %13 = vsyncpa [#allocation3], 0  ;;  %vm90_vm4 = vcmask 15360   ;;  %v212_v36 = vadd.f32 -1.0, %v46_v21  ;;  %vm49_vm5 = vcmask 254976   ;;  %v221_v37 = vadd.f32 -1.0, %v136_v26 }
   0xb   :  { %v124_v38 = vadd.f32 %v123_v29, %v121_v31  ;;  %v91_v39 = vsel %vm90_vm4, %v86_v30, 0.0  ;;  %v92_v40 = vsel %vm90_vm4, %v87_v32, 0.0  ;;  %v94_v41 = vsel %vm90_vm4, %v88_v33, 0.0  ;;  %v180_v45 = vld [vmem:[%s364_s7] sm:$0x3f]  ;;  %s201_s13 = sshll.u32 %s365_s8, 4  ;;  %s202_s13 = int_to_ptr.hbm [resolvable:$true] %s201_s13 }
   0xc   :  { %v93_v42 = vadd.f32 %v92_v40, %v91_v39  ;;  %v48_v43 = vmul.f32 %v212_v36, %v212_v36  ;;  %v222_v44 = vadd.f32 -1.0, %v137_v35  ;;  %v158_v46 = vld [vmem:[%s363_s6] sm:$0xff]  ;;  %v159_v47 = vld [vmem:[%s363_s6 + $0x8] sm:$0x3]  ;;  %v96_v48 = vsel %vm90_vm4, %v89_v34, 0.0  ;;  %s257_s2 = smov [#allocation2]  }
   0xd   :  { %125 = vadd.xlane.f32.xlu2 %v124_v38  ;;  %v140_v49 = vmul.f32 %v221_v37, %v221_v37  ;;  %vm142_vm6 = vcmask 39936   ;;  %vm144_vm7 = vcmask 37888   ;;  %v225_v54 = vadd.f32 -1.0, %v180_v45 }
   0xe   :  { %v95_v50 = vadd.f32 %v94_v41, %v93_v42  ;;  %v50_v51 = vsel %vm49_vm5, %v48_v43, 0.0  ;;  %v141_v52 = vmul.f32 %v222_v44, %v222_v44  ;;  %v223_v55 = vadd.f32 -1.0, %v158_v46 }
   0xf   :  { %v143_v53 = vsel %vm142_vm6, %v140_v49, 0.0  ;;  %v224_v56 = vadd.f32 -1.0, %v159_v47  ;;  %vm164_vm8 = vcmask 56320   ;;  %vm166_vm9 = vcmask 50176  }
  0x10   :  { %v97_v57 = vadd.f32 %v96_v48, %v95_v50  ;;  %51 = vadd.xlane.f32.xlu0 %v50_v51  ;;  %v145_v58 = vsel %vm144_vm7, %v141_v52, 0.0  ;;  %v162_v60 = vmul.f32 %v223_v55, %v223_v55  ;;  %v182_v62 = vmul.f32 %v225_v54, %v225_v54 }
  0x11   :  { %v146_v59 = vadd.f32 %v145_v58, %v143_v53  ;;  %v163_v61 = vmul.f32 %v224_v56, %v224_v56  ;;  %vm183_vm10 = vcmask 87040  }
  0x12   :  { %98 = vadd.xlane.f32.xlu1 %v97_v57  ;;  %v165_v63 = vsel %vm164_vm8, %v162_v60, 0.0  ;;  %v184_v2 = vsel %vm183_vm10, %v182_v62, 0.0 }
  0x13   :  { %v167_v0 = vsel %vm166_vm9, %v163_v61, 0.0 }
  0x14   :  { %v168_v1 = vadd.f32 %v167_v0, %v165_v63 }
  0x15   :  { %147 = vadd.xlane.f32.xlu2 %v146_v59 }
  0x18   :  { %169 = vadd.xlane.f32.xlu0 %v168_v1 }
  0x1a   :  { %185 = vadd.xlane.f32.xlu1 %v184_v2 }
  0x7a   :  { %v68_v3 = vpop.xlane.xlu1 %67 }
  0x7b   :  { %v36_v4 = vpop.xlane.xlu0 %35  ;;  %v69_v5 = vrot.slane %v68_v3, 4 }
  0x7c   :  { %v37_v6 = vrot.slane %v36_v4, 4 }
  0x7d   :  { %v70_v8 = vadd.f32 %v69_v5, %v68_v3 }
  0x7e   :  { %v38_v7 = vadd.f32 %v37_v6, %v36_v4 }
  0x7f   :  { %v71_v13 = vrot.slane %v70_v8, 2 }
  0x80   :  { %v39_v9 = vrot.slane %v38_v7, 2  ;;  %v126_v10 = vpop.xlane.xlu2 %125 }
  0x81   :  { %v127_v11 = vrot.slane %v126_v10, 4  ;;  %v72_v23 = vadd.f32 %v71_v13, %v70_v8 }
  0x82   :  { %v40_v12 = vadd.f32 %v39_v9, %v38_v7 }
  0x83   :  { %v128_v14 = vadd.f32 %v127_v11, %v126_v10  ;;  %v52_v15 = vpop.xlane.xlu0 %51  ;;  %v73_v33 = vrot.slane %v72_v23, 1 }
  0x84   :  { %v53_v16 = vrot.slane %v52_v15, 4  ;;  %v41_v17 = vrot.slane %v40_v12, 1 }
  0x85   :  { %v129_v18 = vrot.slane %v128_v14, 2  ;;  %v99_v19 = vpop.xlane.xlu1 %98  ;;  %v74_v45 = vadd.f32 %v73_v33, %v72_v23 }
  0x86   :  { %v100_v20 = vrot.slane %v99_v19, 4  ;;  %v54_v21 = vadd.f32 %v53_v16, %v52_v15  ;;  %v42_v22 = vadd.f32 %v41_v17, %v40_v12 }
  0x87   :  { %v130_v28 = vadd.f32 %v129_v18, %v128_v14 }
  0x88   :  { %v101_v24 = vadd.f32 %v100_v20, %v99_v19  ;;  %v55_v25 = vrot.slane %v54_v21, 2  ;;  %v148_v26 = vpop.xlane.xlu2 %147  ;;  %226 = vpush %v42_v22 }
  0x89   :  { %v149_v27 = vrot.slane %v148_v26, 4  ;;  %v131_v39 = vrot.slane %v130_v28, 1 }
  0x8a   :  { %v102_v29 = vrot.slane %v101_v24, 2  ;;  %v56_v30 = vadd.f32 %v55_v25, %v54_v21 }
  0x8b   :  { %v150_v31 = vadd.f32 %v149_v27, %v148_v26  ;;  %v170_v32 = vpop.xlane.xlu0 %169  ;;  %v132_v49 = vadd.f32 %v131_v39, %v130_v28 }
  0x8c   :  { %v171_v34 = vrot.slane %v170_v32, 4  ;;  %v57_v35 = vrot.slane %v56_v30, 1  ;;  %v103_v36 = vadd.f32 %v102_v29, %v101_v24 }
  0x8d   :  { %v151_v37 = vrot.slane %v150_v31, 2  ;;  %v186_v38 = vpop.xlane.xlu1 %185 }
  0x8e   :  { %v187_v40 = vrot.slane %v186_v38, 4  ;;  %v172_v41 = vadd.f32 %v171_v34, %v170_v32  ;;  %v58_v42 = vadd.f32 %v57_v35, %v56_v30  ;;  %v104_v43 = vrot.slane %v103_v36, 1 }
  0x8f   :  { %v152_v44 = vadd.f32 %v151_v37, %v150_v31 }
  0x90   :  { %v188_v46 = vadd.f32 %v187_v40, %v186_v38  ;;  %v173_v47 = vrot.slane %v172_v41, 2  ;;  %228 = vpush %v58_v42  ;;  %v105_v48 = vadd.f32 %v104_v43, %v103_v36 }
  0x91   :  { %230 = vpush %v74_v45  ;;  %v153_v50 = vrot.slane %v152_v44, 1 }
  0x92   :  { %v189_v51 = vrot.slane %v188_v46, 2  ;;  %v174_v52 = vadd.f32 %v173_v47, %v172_v41  ;;  %232 = vpush %v105_v48 }
  0x93   :  { %234 = vpush %v132_v49  ;;  %v154_v53 = vadd.f32 %v153_v50, %v152_v44 }
  0x94   :  { %v190_v54 = vadd.f32 %v189_v51, %v188_v46  ;;  %v175_v55 = vrot.slane %v174_v52, 1 }
  0x95   :  { %236 = vpush %v154_v53 }
  0x96   :  { %v176_v56 = vadd.f32 %v175_v55, %v174_v52  ;;  %v191_v57 = vrot.slane %v190_v54, 1 }
  0x98   :  { %238 = vpush %v176_v56  ;;  %v192_v58 = vadd.f32 %v191_v57, %v190_v54 }
  0x9a   :  { %240 = vpush %v192_v58 }
  0xb9   :  { %s227_s6 = spop %226 }
  0xba   :  { %45 = sst [smem:[#allocation2]] %s227_s6 }
  0xc1   :  { %s229_s7 = spop %228 }
  0xc2   :  { %61 = sst [smem:[#allocation2 + $0x1]] %s229_s7  ;;  %s231_s29 = spop %230 }
  0xc3   :  { %77 = sst [smem:[#allocation2 + $0x2]] %s231_s29  ;;  %s233_s30 = spop %232 }
  0xc4   :  { %108 = sst [smem:[#allocation2 + $0x3]] %s233_s30  ;;  %s235_s9 = spop %234 }
  0xc5   :  { %135 = sst [smem:[#allocation2 + $0x4]] %s235_s9 }
  0xc6   :  { %s237_s10 = spop %236 }
  0xc7   :  { %157 = sst [smem:[#allocation2 + $0x5]] %s237_s10 }
  0xc9   :  { %s239_s14 = spop %238 }
  0xca   :  { %179 = sst [smem:[#allocation2 + $0x6]] %s239_s14 }
  0xcb   :  { %s241_s0 = spop %240 }
  0xcc   :  { %195 = sst [smem:[#allocation2 + $0x7]] %s241_s0 }
  0xcd   :  { %204 = dma.smem_to_hbm %s257_s2, 16, %s202_s13, [#allocation3]  }
  0xce   :  { %255 = dma.done.wait [#allocation3], 16  }
  0xcf   :  { %256 = vsyncadd [#allocation3], 4294967280 }
  0xd0   :  { %209 = sfence }
  0xd1   :  { %210 = vsyncpa [#allocation3], 1 }

</bundles_post_ra>
